<compile_context>
chip_gen: v6e
topology: v6e:2x2x1
jax: 0.10.0
libtpu: 0.0.40
codegen_flags: <defaults>
</compile_context>

<pallas_src>
import functools

import jax
import jax.numpy as jnp
from jax.experimental import pallas as pl
from jax.experimental.pallas import tpu as pltpu


def _hsimple_kernel(
    # scalar-prefetch refs (SMEM), each full (B,) int32
    r_idx_ref, e1_idx_ref, e2_idx_ref, e3_idx_ref, e4_idx_ref,
    e5_idx_ref, e6_idx_ref,
    # VMEM-resident embedding tables
    r_tbl_ref, e_tbl_ref,
    # output block (block_b, 1)
    o_ref,
    # VMEM scratch: gathered rows, (block_b, D) each
    gr, g1, g2, g3, g4, g5, g6,
    *, block_b, shifts):
  D = r_tbl_ref.shape[1]
  base = pl.program_id(0) * block_b

  # ---- in-kernel row gather (tables in VMEM, indices in SMEM) ----
  @pl.loop(0, block_b)
  def _(b):
    row = base + b
    gr[pl.ds(b, 1), :] = r_tbl_ref[pl.ds(r_idx_ref[row], 1), :]
    g1[pl.ds(b, 1), :] = e_tbl_ref[pl.ds(e1_idx_ref[row], 1), :]
    g2[pl.ds(b, 1), :] = e_tbl_ref[pl.ds(e2_idx_ref[row], 1), :]
    g3[pl.ds(b, 1), :] = e_tbl_ref[pl.ds(e3_idx_ref[row], 1), :]
    g4[pl.ds(b, 1), :] = e_tbl_ref[pl.ds(e4_idx_ref[row], 1), :]
    g5[pl.ds(b, 1), :] = e_tbl_ref[pl.ds(e5_idx_ref[row], 1), :]
    g6[pl.ds(b, 1), :] = e_tbl_ref[pl.ds(e6_idx_ref[row], 1), :]

  # ---- HSimplE circular shifts (XLU rolls) ----
  # torch shift(v, s) = cat(v[:, s:], v[:, :s]) == jnp.roll(v, -s, axis=1),
  # expressed as a non-negative roll amount (D - s) % D.
  r  = gr[...]
  e1 = g1[...]
  e2 = pltpu.roll(g2[...], (D - shifts[0]) % D, axis=1)
  e3 = pltpu.roll(g3[...], (D - shifts[1]) % D, axis=1)
  e4 = pltpu.roll(g4[...], (D - shifts[2]) % D, axis=1)
  e5 = pltpu.roll(g5[...], (D - shifts[3]) % D, axis=1)
  e6 = pltpu.roll(g6[...], (D - shifts[4]) % D, axis=1)

  # ---- balanced 7-way product (VPU) + reduction over emb_dim (XLU) ----
  x = (r * e1) * (e2 * e3) * ((e4 * e5) * e6)
  # dropout: identity (eval mode)
  o_ref[...] = jnp.sum(x, axis=1, keepdims=True).astype(o_ref.dtype)


def hsimple_forward(R_weight, E_weight,
                    r_idx, e1_idx, e2_idx, e3_idx, e4_idx, e5_idx, e6_idx,
                    *, block_b=128, max_arity=6):
  """HSimplE forward. Returns a (B,) float32 array of scores."""
  num_rel, D = R_weight.shape
  num_ent, D2 = E_weight.shape
  assert D == D2
  B = r_idx.shape[0]
  block_b = min(block_b, B)
  assert B % block_b == 0, "batch must be divisible by block_b (pad ragged batches)"

  # PyTorch: int(k * emb_dim / max_arity) for entity position k+1.
  shifts = tuple(int(k * D / max_arity) for k in range(1, max_arity))

  idx_args = [jnp.asarray(a, jnp.int32) for a in
              (r_idx, e1_idx, e2_idx, e3_idx, e4_idx, e5_idx, e6_idx)]

  kernel = functools.partial(_hsimple_kernel, block_b=block_b, shifts=shifts)

  # Tables: full-array blocks, constant index_map -> DMA'd once, VMEM-resident.
  r_tbl_spec = pl.BlockSpec((num_rel, D), lambda i, *_: (0, 0))
  e_tbl_spec = pl.BlockSpec((num_ent, D), lambda i, *_: (0, 0))
  out_spec = pl.BlockSpec((block_b, 1), lambda i, *_: (i, 0))

  out = pl.pallas_call(
      kernel,
      out_shape=jax.ShapeDtypeStruct((B, 1), jnp.float32),
      grid_spec=pltpu.PrefetchScalarGridSpec(
          num_scalar_prefetch=7,
          grid=(B // block_b,),
          in_specs=[r_tbl_spec, e_tbl_spec],
          out_specs=out_spec,
          scratch_shapes=[pltpu.VMEM((block_b, D), jnp.float32)] * 7,
      ),
      compiler_params=pltpu.CompilerParams(
          dimension_semantics=("parallel",),
          # VMEM use ~= tables + 7*block_b*D*4B scratch; well under every
          # generation's scoped default at block_b<=2048, D=128.  For larger
          # tiles (esp. v5e's 16 MiB scoped default) raise:
          #   vmem_limit_bytes=64 * 1024 * 1024,
      ),
  )(*idx_args, R_weight.astype(jnp.float32), E_weight.astype(jnp.float32))
  return out[:, 0]


if __name__ == "__main__":
  key = jax.random.PRNGKey(0)
  num_ent, num_rel, emb_dim, max_arity = 40, 12, 128, 6
  batch = 256
  block_b = 128   # -> 2 "parallel" grid steps (keeps v7x's 2nd TC busy)

  kE, kR, k_r, *k_es = jax.random.split(key, 10)

  # Parameters: row 0 = ones (padding idx), others ~ N(0, 1).  (Xavier scaling
  # is irrelevant to the forward pass; unit variance keeps the correctness
  # tolerance meaningful.)
  E_weight = jax.random.normal(kE, (num_ent, emb_dim), jnp.float32)
  R_weight = jax.random.normal(kR, (num_rel, emb_dim), jnp.float32)
  E_weight = E_weight.at[0].set(1.0)
  R_weight = R_weight.at[0].set(1.0)

  r_idx = jax.random.randint(k_r, (batch,), 0, num_rel)
  e_idx = [jax.random.randint(k, (batch,), 0, num_ent) for k in k_es[:6]]

  out = hsimple_forward(R_weight, E_weight, r_idx, *e_idx, block_b=block_b)
  out = jax.block_until_ready(out)

  # Reference: literal transcription of the PyTorch forward in plain JAX.
  def shift(v, sh):
    return jnp.concatenate([v[:, sh:], v[:, :sh]], axis=1)

  sh = [int(k * emb_dim / max_arity) for k in range(1, max_arity)]
  ref = jnp.sum(
      R_weight[r_idx]
      * E_weight[e_idx[0]]
      * shift(E_weight[e_idx[1]], sh[0])
      * shift(E_weight[e_idx[2]], sh[1])
      * shift(E_weight[e_idx[3]], sh[2])
      * shift(E_weight[e_idx[4]], sh[3])
      * shift(E_weight[e_idx[5]], sh[4]),
      axis=1)

  assert out.shape == (batch,)
  assert jnp.allclose(out, ref, rtol=1e-4, atol=1e-3), (
      "max abs err = %e" % float(jnp.max(jnp.abs(out - ref))))

  print("KERNEL_OK")
</pallas_src>

<mosaic_0001>
module attributes {stable_mosaic.version = 11 : i64} {
  func.func @_hsimple_kernel(%arg0: i32, %arg1: memref<256xi32, #tpu.memory_space<smem>>, %arg2: memref<256xi32, #tpu.memory_space<smem>>, %arg3: memref<256xi32, #tpu.memory_space<smem>>, %arg4: memref<256xi32, #tpu.memory_space<smem>>, %arg5: memref<256xi32, #tpu.memory_space<smem>>, %arg6: memref<256xi32, #tpu.memory_space<smem>>, %arg7: memref<256xi32, #tpu.memory_space<smem>>, %arg8: memref<12x128xf32, #tpu.memory_space<vmem>>, %arg9: memref<40x128xf32, #tpu.memory_space<vmem>>, %arg10: memref<128x1xf32, #tpu.memory_space<vmem>>, %arg11: memref<128x128xf32, #tpu.memory_space<vmem>>, %arg12: memref<128x128xf32, #tpu.memory_space<vmem>>, %arg13: memref<128x128xf32, #tpu.memory_space<vmem>>, %arg14: memref<128x128xf32, #tpu.memory_space<vmem>>, %arg15: memref<128x128xf32, #tpu.memory_space<vmem>>, %arg16: memref<128x128xf32, #tpu.memory_space<vmem>>, %arg17: memref<128x128xf32, #tpu.memory_space<vmem>>) attributes {dimension_semantics = [#tpu.dimension_semantics<parallel>], iteration_bounds = array<i64: 2>, scalar_prefetch = 7 : i64, scratch_operands = 7 : i64, tpu.core_type = #tpu.core_type<tc>, window_params = [{pipeline_mode = #tpu.pipeline_mode<synchronous>, transform_indices = @transform_0, window_bounds = array<i64: 12, 128>}, {pipeline_mode = #tpu.pipeline_mode<synchronous>, transform_indices = @transform_1, window_bounds = array<i64: 40, 128>}, {transform_indices = @transform_2, window_bounds = array<i64: 128, 1>}]} {
    %c128_i32 = arith.constant 128 : i32
    %0 = arith.muli %arg0, %c128_i32 : i32
    %c0_i32 = arith.constant 0 : i32
    %c128_i32_0 = arith.constant 128 : i32
    %1 = arith.addi %c0_i32, %c128_i32_0 : i32
    %c1_i32 = arith.constant 1 : i32
    scf.for %arg18 = %c0_i32 to %1 step %c1_i32  : i32 {
      %c1_i32_17 = arith.constant 1 : i32
      %23 = arith.muli %arg18, %c1_i32_17 : i32
      %c0_i32_18 = arith.constant 0 : i32
      %24 = arith.addi %c0_i32_18, %23 : i32
      %25 = arith.addi %0, %24 : i32
      %26 = arith.index_cast %25 : i32 to index
      %27 = memref.load %arg1[%26] : memref<256xi32, #tpu.memory_space<smem>>
      %28 = arith.index_cast %27 : i32 to index
      %c0_19 = arith.constant 0 : index
      %29 = vector.load %arg8[%28, %c0_19] : memref<12x128xf32, #tpu.memory_space<vmem>>, vector<1x128xf32>
      %30 = arith.index_cast %24 : i32 to index
      %c0_20 = arith.constant 0 : index
      %31 = vector.load %arg11[%30, %c0_20] : memref<128x128xf32, #tpu.memory_space<vmem>>, vector<1x128xf32>
      tpu.vector_store %arg11[%30, %c0_20], %29 {strides = array<i32>} : memref<128x128xf32, #tpu.memory_space<vmem>>, vector<1x128xf32>,
      %32 = arith.index_cast %25 : i32 to index
      %33 = memref.load %arg2[%32] : memref<256xi32, #tpu.memory_space<smem>>
      %34 = arith.index_cast %33 : i32 to index
      %c0_21 = arith.constant 0 : index
      %35 = vector.load %arg9[%34, %c0_21] : memref<40x128xf32, #tpu.memory_space<vmem>>, vector<1x128xf32>
      %36 = arith.index_cast %24 : i32 to index
      %c0_22 = arith.constant 0 : index
      %37 = vector.load %arg12[%36, %c0_22] : memref<128x128xf32, #tpu.memory_space<vmem>>, vector<1x128xf32>
      tpu.vector_store %arg12[%36, %c0_22], %35 {strides = array<i32>} : memref<128x128xf32, #tpu.memory_space<vmem>>, vector<1x128xf32>,
      %38 = arith.index_cast %25 : i32 to index
      %39 = memref.load %arg3[%38] : memref<256xi32, #tpu.memory_space<smem>>
      %40 = arith.index_cast %39 : i32 to index
      %c0_23 = arith.constant 0 : index
      %41 = vector.load %arg9[%40, %c0_23] : memref<40x128xf32, #tpu.memory_space<vmem>>, vector<1x128xf32>
      %42 = arith.index_cast %24 : i32 to index
      %c0_24 = arith.constant 0 : index
      %43 = vector.load %arg13[%42, %c0_24] : memref<128x128xf32, #tpu.memory_space<vmem>>, vector<1x128xf32>
      tpu.vector_store %arg13[%42, %c0_24], %41 {strides = array<i32>} : memref<128x128xf32, #tpu.memory_space<vmem>>, vector<1x128xf32>,
      %44 = arith.index_cast %25 : i32 to index
      %45 = memref.load %arg4[%44] : memref<256xi32, #tpu.memory_space<smem>>
      %46 = arith.index_cast %45 : i32 to index
      %c0_25 = arith.constant 0 : index
      %47 = vector.load %arg9[%46, %c0_25] : memref<40x128xf32, #tpu.memory_space<vmem>>, vector<1x128xf32>
      %48 = arith.index_cast %24 : i32 to index
      %c0_26 = arith.constant 0 : index
      %49 = vector.load %arg14[%48, %c0_26] : memref<128x128xf32, #tpu.memory_space<vmem>>, vector<1x128xf32>
      tpu.vector_store %arg14[%48, %c0_26], %47 {strides = array<i32>} : memref<128x128xf32, #tpu.memory_space<vmem>>, vector<1x128xf32>,
      %50 = arith.index_cast %25 : i32 to index
      %51 = memref.load %arg5[%50] : memref<256xi32, #tpu.memory_space<smem>>
      %52 = arith.index_cast %51 : i32 to index
      %c0_27 = arith.constant 0 : index
      %53 = vector.load %arg9[%52, %c0_27] : memref<40x128xf32, #tpu.memory_space<vmem>>, vector<1x128xf32>
      %54 = arith.index_cast %24 : i32 to index
      %c0_28 = arith.constant 0 : index
      %55 = vector.load %arg15[%54, %c0_28] : memref<128x128xf32, #tpu.memory_space<vmem>>, vector<1x128xf32>
      tpu.vector_store %arg15[%54, %c0_28], %53 {strides = array<i32>} : memref<128x128xf32, #tpu.memory_space<vmem>>, vector<1x128xf32>,
      %56 = arith.index_cast %25 : i32 to index
      %57 = memref.load %arg6[%56] : memref<256xi32, #tpu.memory_space<smem>>
      %58 = arith.index_cast %57 : i32 to index
      %c0_29 = arith.constant 0 : index
      %59 = vector.load %arg9[%58, %c0_29] : memref<40x128xf32, #tpu.memory_space<vmem>>, vector<1x128xf32>
      %60 = arith.index_cast %24 : i32 to index
      %c0_30 = arith.constant 0 : index
      %61 = vector.load %arg16[%60, %c0_30] : memref<128x128xf32, #tpu.memory_space<vmem>>, vector<1x128xf32>
      tpu.vector_store %arg16[%60, %c0_30], %59 {strides = array<i32>} : memref<128x128xf32, #tpu.memory_space<vmem>>, vector<1x128xf32>,
      %62 = arith.index_cast %25 : i32 to index
      %63 = memref.load %arg7[%62] : memref<256xi32, #tpu.memory_space<smem>>
      %64 = arith.index_cast %63 : i32 to index
      %c0_31 = arith.constant 0 : index
      %65 = vector.load %arg9[%64, %c0_31] : memref<40x128xf32, #tpu.memory_space<vmem>>, vector<1x128xf32>
      %66 = arith.index_cast %24 : i32 to index
      %c0_32 = arith.constant 0 : index
      %67 = vector.load %arg17[%66, %c0_32] : memref<128x128xf32, #tpu.memory_space<vmem>>, vector<1x128xf32>
      tpu.vector_store %arg17[%66, %c0_32], %65 {strides = array<i32>} : memref<128x128xf32, #tpu.memory_space<vmem>>, vector<1x128xf32>,
    }
    %c128_i32_1 = arith.constant 128 : i32
    %c0 = arith.constant 0 : index
    %c0_2 = arith.constant 0 : index
    %2 = vector.load %arg11[%c0, %c0_2] : memref<128x128xf32, #tpu.memory_space<vmem>>, vector<128x128xf32>
    %c0_3 = arith.constant 0 : index
    %c0_4 = arith.constant 0 : index
    %3 = vector.load %arg12[%c0_3, %c0_4] : memref<128x128xf32, #tpu.memory_space<vmem>>, vector<128x128xf32>
    %c0_5 = arith.constant 0 : index
    %c0_6 = arith.constant 0 : index
    %4 = vector.load %arg13[%c0_5, %c0_6] : memref<128x128xf32, #tpu.memory_space<vmem>>, vector<128x128xf32>
    %c107_i32 = arith.constant 107 : i32
    %5 = tpu.dynamic_rotate %4 by %c107_i32 dim 1 : vector<128x128xf32>, i32 -> vector<128x128xf32>
    %c0_7 = arith.constant 0 : index
    %c0_8 = arith.constant 0 : index
    %6 = vector.load %arg14[%c0_7, %c0_8] : memref<128x128xf32, #tpu.memory_space<vmem>>, vector<128x128xf32>
    %c86_i32 = arith.constant 86 : i32
    %7 = tpu.dynamic_rotate %6 by %c86_i32 dim 1 : vector<128x128xf32>, i32 -> vector<128x128xf32>
    %c0_9 = arith.constant 0 : index
    %c0_10 = arith.constant 0 : index
    %8 = vector.load %arg15[%c0_9, %c0_10] : memref<128x128xf32, #tpu.memory_space<vmem>>, vector<128x128xf32>
    %c64_i32 = arith.constant 64 : i32
    %9 = tpu.dynamic_rotate %8 by %c64_i32 dim 1 : vector<128x128xf32>, i32 -> vector<128x128xf32>
    %c0_11 = arith.constant 0 : index
    %c0_12 = arith.constant 0 : index
    %10 = vector.load %arg16[%c0_11, %c0_12] : memref<128x128xf32, #tpu.memory_space<vmem>>, vector<128x128xf32>
    %c43_i32 = arith.constant 43 : i32
    %11 = tpu.dynamic_rotate %10 by %c43_i32 dim 1 : vector<128x128xf32>, i32 -> vector<128x128xf32>
    %c0_13 = arith.constant 0 : index
    %c0_14 = arith.constant 0 : index
    %12 = vector.load %arg17[%c0_13, %c0_14] : memref<128x128xf32, #tpu.memory_space<vmem>>, vector<128x128xf32>
    %c22_i32 = arith.constant 22 : i32
    %13 = tpu.dynamic_rotate %12 by %c22_i32 dim 1 : vector<128x128xf32>, i32 -> vector<128x128xf32>
    %14 = arith.mulf %2, %3 : vector<128x128xf32>
    %15 = arith.mulf %5, %7 : vector<128x128xf32>
    %16 = arith.mulf %14, %15 : vector<128x128xf32>
    %17 = arith.mulf %9, %11 : vector<128x128xf32>
    %18 = arith.mulf %17, %13 : vector<128x128xf32>
    %19 = arith.mulf %16, %18 : vector<128x128xf32>
    %cst = arith.constant dense<0.000000e+00> : vector<128xf32>
    %20 = vector.multi_reduction <add>, %19, %cst [1] : vector<128x128xf32> to vector<128xf32>
    %21 = vector.shape_cast %20 : vector<128xf32> to vector<128x1xf32>
    %c0_15 = arith.constant 0 : index
    %c0_16 = arith.constant 0 : index
    %22 = vector.load %arg10[%c0_15, %c0_16] : memref<128x1xf32, #tpu.memory_space<vmem>>, vector<128x1xf32>
    tpu.vector_store %arg10[%c0_15, %c0_16], %21 {strides = array<i32>} : memref<128x1xf32, #tpu.memory_space<vmem>>, vector<128x1xf32>,
    return
  }
  func.func @transform_0(%arg0: i32, %arg1: memref<256xi32, #tpu.memory_space<smem>>, %arg2: memref<256xi32, #tpu.memory_space<smem>>, %arg3: memref<256xi32, #tpu.memory_space<smem>>, %arg4: memref<256xi32, #tpu.memory_space<smem>>, %arg5: memref<256xi32, #tpu.memory_space<smem>>, %arg6: memref<256xi32, #tpu.memory_space<smem>>, %arg7: memref<256xi32, #tpu.memory_space<smem>>) -> (i32, i32) {
    %c0_i32 = arith.constant 0 : i32
    %c0_i32_0 = arith.constant 0 : i32
    %c0_i32_1 = arith.constant 0 : i32
    return %c0_i32, %c0_i32_0 : i32, i32
  }
  func.func @transform_1(%arg0: i32, %arg1: memref<256xi32, #tpu.memory_space<smem>>, %arg2: memref<256xi32, #tpu.memory_space<smem>>, %arg3: memref<256xi32, #tpu.memory_space<smem>>, %arg4: memref<256xi32, #tpu.memory_space<smem>>, %arg5: memref<256xi32, #tpu.memory_space<smem>>, %arg6: memref<256xi32, #tpu.memory_space<smem>>, %arg7: memref<256xi32, #tpu.memory_space<smem>>) -> (i32, i32) {
    %c0_i32 = arith.constant 0 : i32
    %c0_i32_0 = arith.constant 0 : i32
    %c0_i32_1 = arith.constant 0 : i32
    return %c0_i32, %c0_i32_0 : i32, i32
  }
  func.func @transform_2(%arg0: i32, %arg1: memref<256xi32, #tpu.memory_space<smem>>, %arg2: memref<256xi32, #tpu.memory_space<smem>>, %arg3: memref<256xi32, #tpu.memory_space<smem>>, %arg4: memref<256xi32, #tpu.memory_space<smem>>, %arg5: memref<256xi32, #tpu.memory_space<smem>>, %arg6: memref<256xi32, #tpu.memory_space<smem>>, %arg7: memref<256xi32, #tpu.memory_space<smem>>) -> (i32, i32) {
    %c0_i32 = arith.constant 0 : i32
    %c0_i32_0 = arith.constant 0 : i32
    return %arg0, %c0_i32 : i32, i32
  }
}

</mosaic_0001>

<bundles_post_ra>
// kernel: tpu_custom_call.1
= control target key start
LH: loop header
LB: loop body
LE: loop exit
PB: predicated region body
PF: predicated region fallthrough
CT: control target
= control target key end

     0   :  { %s951_s30 = smov [#allocation10]   ;;  %s952_s12 = smov [#allocation11]   ;;  %s1295_s0 = inlined_call_operand.hbm [shape: s32[256], index: 0, kind: input, shape index: {}]   ;;  %s1296_s7 = inlined_call_operand.hbm [shape: f32[12,128], index: 7, kind: input, shape index: {}]   ;;  %s1297_s8 = inlined_call_operand.hbm [shape: f32[40,128], index: 8, kind: input, shape index: {}]   ;;  %s1298_s9 = inlined_call_operand.vmem [shape: f32[256,1], index: 9, kind: output, shape index: {}]   ;;  %s1299_s1 = inlined_call_operand.hbm [shape: s32[256], index: 1, kind: input, shape index: {}]   ;;  %s1300_s2 = inlined_call_operand.vmem [shape: s32[256], index: 2, kind: input, shape index: {}]   ;;  %s1301_s3 = inlined_call_operand.vmem [shape: s32[256], index: 3, kind: input, shape index: {}]   ;;  %s1302_s4 = inlined_call_operand.vmem [shape: s32[256], index: 4, kind: input, shape index: {}]   ;;  %s1303_s5 = inlined_call_operand.vmem [shape: s32[256], index: 5, kind: input, shape index: {}]   ;;  %s1304_s6 = inlined_call_operand.vmem [shape: s32[256], index: 6, kind: input, shape index: {}]  }
   0x1   :  { %15 = dma.hbm_to_smem %s1295_s0, 32, %s951_s30, [#allocation9] }
   0x2   :  { %17 = dma.hbm_to_smem %s1299_s1, 32, %s952_s12, [#allocation9] }
   0x3   :  { %s18_s17 = sshll.u32 %s1300_s2, 4  ;;  %s22_s20 = sshll.u32 %s1301_s3, 4  ;;  %s19_s17 = int_to_ptr.vmem [resolvable:$true] %s18_s17  ;;  %s23_s20 = int_to_ptr.vmem [resolvable:$true] %s22_s20 }
   0x4   :  { %s813_s21 = scalar_lea.vmem %s19_s17, 32  ;;  %p818_p1 = scmp.lt.s32.totalorder %s19_s17, %s19_s17 }
   0x5   :  { %p814_p0 = scmp.ne.s32.totalorder %s19_s17, %s813_s21  ;;  %p819_p2 = scmp.lt.s32.totalorder %s813_s21, %s813_s21 }
   0x7   :  { %p820_p3 = por %p819_p2, %p818_p1 }
   0x9   :  { %p821_p4 = pnand %p820_p3, %p814_p0 }
   0xb   :  { %824 = shalt.err (!%p821_p4)  }
   0xc   :  { %s953_s0 = smov [#allocation12]   ;;  %s825_s1 = scalar_lea.vmem %s23_s20, 32 }
   0xd   :  { %21 = dma.vmem_to_smem %s19_s17, 32, %s953_s0, [#allocation9] }
   0xe   :  { %p826_p5 = scmp.ne.s32.totalorder %s23_s20, %s825_s1  ;;  %p830_p6 = scmp.lt.s32.totalorder %s23_s20, %s23_s20 }
   0xf   :  { %p831_p7 = scmp.lt.s32.totalorder %s825_s1, %s825_s1 }
  0x11   :  { %p832_p8 = por %p831_p7, %p830_p6 }
  0x13   :  { %p833_p9 = pnand %p832_p8, %p826_p5 }
  0x15   :  { %836 = shalt.err (!%p833_p9)  }
  0x16   :  { %s954_s2 = smov [#allocation13]   ;;  %s26_s23 = sshll.u32 %s1302_s4, 4  ;;  %s27_s23 = int_to_ptr.vmem [resolvable:$true] %s26_s23 }
  0x17   :  { %25 = dma.vmem_to_smem %s23_s20, 32, %s954_s2, [#allocation9] }
  0x18   :  { %s30_s26 = sshll.u32 %s1303_s5, 4  ;;  %s837_s27 = scalar_lea.vmem %s27_s23, 32  ;;  %s31_s26 = int_to_ptr.vmem [resolvable:$true] %s30_s26 }
  0x19   :  { %p838_p10 = scmp.ne.s32.totalorder %s27_s23, %s837_s27  ;;  %p842_p11 = scmp.lt.s32.totalorder %s27_s23, %s27_s23 }
  0x1a   :  { %p843_p12 = scmp.lt.s32.totalorder %s837_s27, %s837_s27 }
  0x1c   :  { %p844_p13 = por %p843_p12, %p842_p11 }
  0x1e   :  { %p845_p0 = pnand %p844_p13, %p838_p10 }
  0x20   :  { %848 = shalt.err (!%p845_p0)  }
  0x21   :  { %s955_s28 = smov [#allocation14]   ;;  %s849_s29 = scalar_lea.vmem %s31_s26, 32 }
  0x22   :  { %29 = dma.vmem_to_smem %s27_s23, 32, %s955_s28, [#allocation9] }
  0x23   :  { %p850_p1 = scmp.ne.s32.totalorder %s31_s26, %s849_s29  ;;  %p854_p2 = scmp.lt.s32.totalorder %s31_s26, %s31_s26 }
  0x24   :  { %p855_p3 = scmp.lt.s32.totalorder %s849_s29, %s849_s29 }
  0x26   :  { %p856_p4 = por %p855_p3, %p854_p2 }
  0x28   :  { %p857_p5 = pnand %p856_p4, %p850_p1 }
  0x2a   :  { %860 = shalt.err (!%p857_p5)  }
  0x2b   :  { %s956_s4 = smov [#allocation15]   ;;  %s34_s10 = sshll.u32 %s1304_s6, 4  ;;  %s35_s10 = int_to_ptr.vmem [resolvable:$true] %s34_s10 }
  0x2c   :  { %33 = dma.vmem_to_smem %s31_s26, 32, %s956_s4, [#allocation9] }
  0x2d   :  { %s861_s11 = scalar_lea.vmem %s35_s10, 32  ;;  %p866_p7 = scmp.lt.s32.totalorder %s35_s10, %s35_s10 }
  0x2e   :  { %p862_p6 = scmp.ne.s32.totalorder %s35_s10, %s861_s11  ;;  %p867_p8 = scmp.lt.s32.totalorder %s861_s11, %s861_s11 }
  0x30   :  { %p868_p9 = por %p867_p8, %p866_p7 }
  0x32   :  { %p869_p10 = pnand %p868_p9, %p862_p6 }
  0x34   :  { %872 = shalt.err (!%p869_p10)  }
  0x35   :  { %s957_s12 = smov [#allocation16]  }
  0x36   :  { %37 = dma.vmem_to_smem %s35_s10, 32, %s957_s12, [#allocation9] }
  0x37   :  { %933 = dma.done.wait [#allocation9], 224 }
  0x38   :  { %934 = vsyncadd [#allocation9], 4294967072 }
  0x39   :  { %39 = sfence }
  0x3a   :  { %40 = vsyncpa [#allocation18], 0 }
  0x3b   :  { %41 = vsyncpa [#allocation20], 0  ;;  %s1038_s13 = smov 0  }
  0x3c LB: > { %s1044_s6 = sadd.s32 4294967295, %s945_s13   ;;  %p735_p11 = scmp.ge.s32.totalorder %s945_s13, 1  ;;  %s945_s13 = sphi %s1038_s13, %s47_s13  }
  0x3d   : > { %p120_p12 = scmp.lt.s32.totalorder %s945_s13, 3  ;;  %s958_s14 = smov [#allocation17]  }
  0x3e   : > { %s132_s15 = sshll.u32 %s958_s14, 4  ;;  %p761_p0 = scmp.eq.s32.totalorder %s1044_s6, 0  ;;  %s133_s15 = int_to_ptr.vmem [resolvable:$true] %s132_s15 }
  0x3f   : > { %p1048_p13 = pnand %p735_p11, %p120_p12  ;;  %s959_s17 = smov [#allocation19]  }
  0x40   : > { %s145_s18 = sshll.u32 %s959_s17, 4  ;;  %s884_s20 = scalar_lea.vmem %s133_s15, 256  ;;  %s146_s18 = int_to_ptr.vmem [resolvable:$true] %s145_s18 }
  0x41   : > { %p754_p1 = pneg %p1048_p13  ;;  %p885_p4 = scmp.ne.s32.totalorder %s133_s15, %s884_s20 }
  0x42   : > { %p892_p7 = scmp.lt.s32.totalorder %s133_s15, %s133_s15  ;;  %p893_p8 = scmp.lt.s32.totalorder %s884_s20, %s884_s20 }
  0x43   : > { %p1057_p2 = pnand %p761_p0, %p754_p1 }
  0x44   : > { %p894_p9 = por %p893_p8, %p892_p7 }
  0x45   : > { %p875_p3 = pneg %p1057_p2 }
  0x47   : > { %p887_p5 = pnand %p885_p4, %p875_p3 }
  0x49   : > { %p888_p6 = pneg %p887_p5 }
  0x4b   : > { %p895_p10 = pnand %p894_p9, %p888_p6 }
  0x4d   : > { %898 = shalt.err (!%p895_p10)
}
  0x4e   : > { %s960_s21 = smov 128   ;;  %s961_s0 = smov 8  }
  0x4f   : > { %757 = dma.hbm_to_vmem [thread:$0]  (!%p1057_p2), %s1296_s7, 256, %s133_s15, [#allocation18], %s960_s21, %s960_s21, %s961_s0  }
  0x50   : > { %s910_s3 = scalar_lea.vmem %s146_s18, 640  ;;  %p918_p4 = scmp.lt.s32.totalorder %s146_s18, %s146_s18 }
  0x51   : > { %p911_p11 = scmp.ne.s32.totalorder %s146_s18, %s910_s3  ;;  %p919_p5 = scmp.lt.s32.totalorder %s910_s3, %s910_s3 }
  0x53   : > { %p913_p12 = pnand %p911_p11, %p875_p3  ;;  %p920_p7 = por %p919_p5, %p918_p4 }
  0x55   : > { %p914_p1 = pneg %p913_p12 }
  0x57   : > { %p921_p6 = pnand %p920_p7, %p914_p1 }
  0x59   : > { %924 = shalt.err (!%p921_p6)
}
  0x5a   : > { %760 = dma.hbm_to_vmem [thread:$0]  (!%p1057_p2), %s1297_s8, 640, %s146_s18, [#allocation20], %s960_s21, %s960_s21, %s961_s0  }
  0x5b   : > { %161 = sbr.rel (%p1048_p13) target bundleno = 542 (0x21e), region = 28 }
  0x60   : > { %936 = dma.done.wait (%p761_p0), [#allocation18], 256  }
  0x61   : > { %938 = vsyncadd (%p761_p0), [#allocation18], 4294967040 }
  0x62   : > { %940 = dma.done.wait (%p761_p0), [#allocation20], 640  }
  0x63   : > { %942 = vsyncadd (%p761_p0), [#allocation20], 4294966656  ;;  %s741_s24 = sshll.u32 %s1044_s6, 4  ;;  %s743_s25 = sshll.u32 %s1044_s6, 7 }
  0x64   : > { %p183_p2 = scmp.lt.s32.totalorder %s741_s24, 31  ;;  %s1096_s4 = smov 0  }
  0x66   : > { %s1324_s24 = smov (!%p183_p2, %s741_s24), 31 }
  0x67   : > { %s742_s26 = sshll.u32 %s1324_s24, 3 }
  0x68   : > { %s1094_s29 = scalar_lea.vmem %s1298_s9, %s742_s26 }
  0x69 LB: >> { %s195_s5 = sadd.s32 %s949_s4, %s743_s25  ;;  %s199_s18 = scalar_lea.vmem [#allocation2], %s949_s4  ;;  %s949_s4 = sphi %s1096_s4, %s194_s4  }
  0x6a   : >> { %s196_s30 = sld [smem:[#allocation10 + %s195_s5]]  ;;  %s204_s20 = scalar_lea.vmem [#allocation3], %s949_s4 }
  0x6b   : >> { %s201_s10 = sld [smem:[#allocation11 + %s195_s5]]  ;;  %s209_s0 = scalar_lea.vmem [#allocation4], %s949_s4 }
  0x6c   : >> { %s206_s11 = sld [smem:[#allocation12 + %s195_s5]]  ;;  %s214_s2 = scalar_lea.vmem [#allocation5], %s949_s4 }
  0x6d   : >> { %s211_s12 = sld [smem:[#allocation13 + %s195_s5]]  ;;  %s219_s22 = scalar_lea.vmem [#allocation6], %s949_s4 }
  0x6e   : >> { %s216_s14 = sld [smem:[#allocation14 + %s195_s5]]  ;;  %s224_s24 = scalar_lea.vmem [#allocation7], %s949_s4 }
  0x6f   : >> { %s221_s15 = sld [smem:[#allocation15 + %s195_s5]]  ;;  %s229_s27 = scalar_lea.vmem [#allocation8], %s949_s4 }
  0x70   : >> { %s226_s16 = sld [smem:[#allocation16 + %s195_s5]]  ;;  %s197_s17 = scalar_lea.vmem [#allocation17], %s196_s30 }
  0x71   : >> { %v198_v0 = vld [vmem:[%s197_s17] sm:$0x1]  ;;  %s202_s19 = scalar_lea.vmem [#allocation19], %s201_s10  ;;  %s194_s4 = sadd.s32 1, %s949_s4  }
  0x72   : >> { %200 = vst [vmem:[%s199_s18] sm:$0x1] %v198_v0  ;;  %v203_v1 = vld [vmem:[%s202_s19] sm:$0x1]  ;;  %s207_s21 = scalar_lea.vmem [#allocation19], %s206_s11  ;;  %p191_p13 = scmp.ge.s32.totalorder %s194_s4, 128  }
  0x73   : >> { %205 = vst [vmem:[%s204_s20] sm:$0x1] %v203_v1  ;;  %v208_v2 = vld [vmem:[%s207_s21] sm:$0x1]  ;;  %s212_s1 = scalar_lea.vmem [#allocation19], %s211_s12  ;;  %s962_s28 = smov (%p191_p13), 107   ;;  %vm631_vm0 = vcmask (%p191_p13), 7168  }
  0x74   : >> { %210 = vst [vmem:[%s209_s0] sm:$0x1] %v208_v2  ;;  %v213_v3 = vld [vmem:[%s212_s1] sm:$0x1]  ;;  %s217_s3 = scalar_lea.vmem [#allocation19], %s216_s14  ;;  %193 = sbr.rel (!%p191_p13) target bundleno = 105 (0x69), region = 85 }
  0x75   : >> { %215 = vst [vmem:[%s214_s2] sm:$0x1] %v213_v3  ;;  %v218_v4 = vld [vmem:[%s217_s3] sm:$0x1]  ;;  %s222_s23 = scalar_lea.vmem [#allocation19], %s221_s15  ;;  %s963_s6 = smov (%p191_p13), 86  }
  0x76   : >> { %220 = vst [vmem:[%s219_s22] sm:$0x1] %v218_v4  ;;  %v223_v5 = vld [vmem:[%s222_s23] sm:$0x1]  ;;  %s227_s26 = scalar_lea.vmem [#allocation19], %s226_s16  ;;  %s964_s25 = smov (%p191_p13), 64  }
  0x77   : >> { %225 = vst [vmem:[%s224_s24] sm:$0x1] %v223_v5  ;;  %v228_v6 = vld [vmem:[%s227_s26] sm:$0x1]  ;;  %s965_s4 = smov (%p191_p13), 43   ;;  %s966_s5 = smov (%p191_p13), 22  }
  0x78   : >> { %230 = vst [vmem:[%s229_s27] sm:$0x1] %v228_v6 }
  0x7b   : > { %v265_v7 = vld [vmem:[#allocation4 + $0x10] sm:$0xff]  ;;  %v263_v8 = vld [vmem:[#allocation4] sm:$0xff]  ;;  %v266_v9 = vld [vmem:[#allocation4 + $0x18] sm:$0xff] }
  0x7c   : > { %283 = vrot.lane.b32.xlu1 %v265_v7, %s962_s28  ;;  %279 = vrot.lane.b32.xlu0 %v263_v8, %s962_s28  ;;  %v264_v10 = vld [vmem:[#allocation4 + $0x8] sm:$0xff]  ;;  %v267_v12 = vld [vmem:[#allocation4 + $0x20] sm:$0xff]  ;;  %v270_v13 = vld [vmem:[#allocation4 + $0x38] sm:$0xff] }
  0x7d   : > { %v268_v11 = vld [vmem:[#allocation4 + $0x28] sm:$0xff]  ;;  %v269_v14 = vld [vmem:[#allocation4 + $0x30] sm:$0xff]  ;;  %v271_v16 = vld [vmem:[#allocation4 + $0x40] sm:$0xff] }
  0x7e   : > { %v272_v15 = vld [vmem:[#allocation4 + $0x48] sm:$0xff]  ;;  %v274_v17 = vld [vmem:[#allocation4 + $0x58] sm:$0xff]  ;;  %v273_v18 = vld [vmem:[#allocation4 + $0x50] sm:$0xff] }
  0x7f   : > { %v276_v19 = vld [vmem:[#allocation4 + $0x68] sm:$0xff]  ;;  %v275_v20 = vld [vmem:[#allocation4 + $0x60] sm:$0xff]  ;;  %v278_v21 = vld [vmem:[#allocation4 + $0x78] sm:$0xff] }
  0x80   : > { %285 = vrot.lane.b32.xlu1 %v266_v9, %s962_s28  ;;  %281 = vrot.lane.b32.xlu0 %v264_v10, %s962_s28  ;;  %v277_v22 = vld [vmem:[#allocation4 + $0x70] sm:$0xff]  ;;  %v312_v23 = vld [vmem:[#allocation5 + $0x8] sm:$0xff]  ;;  %v311_v24 = vld [vmem:[#allocation5] sm:$0xff] }
  0x81   : > { %v314_v25 = vld [vmem:[#allocation5 + $0x18] sm:$0xff]  ;;  %v313_v26 = vld [vmem:[#allocation5 + $0x10] sm:$0xff]  ;;  %v316_v27 = vld [vmem:[#allocation5 + $0x28] sm:$0xff] }
  0x82   : > { %v315_v28 = vld [vmem:[#allocation5 + $0x20] sm:$0xff]  ;;  %v318_v29 = vld [vmem:[#allocation5 + $0x38] sm:$0xff]  ;;  %v317_v30 = vld [vmem:[#allocation5 + $0x30] sm:$0xff] }
  0x83   : > { %v320_v31 = vld [vmem:[#allocation5 + $0x48] sm:$0xff]  ;;  %v319_v32 = vld [vmem:[#allocation5 + $0x40] sm:$0xff]  ;;  %v322_v33 = vld [vmem:[#allocation5 + $0x58] sm:$0xff] }
  0x84   : > { %289 = vrot.lane.b32.xlu1 %v268_v11, %s962_s28  ;;  %287 = vrot.lane.b32.xlu0 %v267_v12, %s962_s28  ;;  %v321_v34 = vld [vmem:[#allocation5 + $0x50] sm:$0xff]  ;;  %v324_v35 = vld [vmem:[#allocation5 + $0x68] sm:$0xff]  ;;  %v323_v36 = vld [vmem:[#allocation5 + $0x60] sm:$0xff] }
  0x85   : > { %v326_v37 = vld [vmem:[#allocation5 + $0x78] sm:$0xff]  ;;  %v325_v38 = vld [vmem:[#allocation5 + $0x70] sm:$0xff]  ;;  %v360_v39 = vld [vmem:[#allocation6 + $0x8] sm:$0xff] }
  0x86   : > { %v359_v40 = vld [vmem:[#allocation6] sm:$0xff]  ;;  %v362_v41 = vld [vmem:[#allocation6 + $0x18] sm:$0xff]  ;;  %v361_v42 = vld [vmem:[#allocation6 + $0x10] sm:$0xff] }
  0x87   : > { %v364_v43 = vld [vmem:[#allocation6 + $0x28] sm:$0xff]  ;;  %v363_v44 = vld [vmem:[#allocation6 + $0x20] sm:$0xff]  ;;  %v366_v45 = vld [vmem:[#allocation6 + $0x38] sm:$0xff] }
  0x88   : > { %293 = vrot.lane.b32.xlu1 %v270_v13, %s962_s28  ;;  %291 = vrot.lane.b32.xlu0 %v269_v14, %s962_s28  ;;  %v365_v46 = vld [vmem:[#allocation6 + $0x30] sm:$0xff]  ;;  %v368_v47 = vld [vmem:[#allocation6 + $0x48] sm:$0xff]  ;;  %v367_v48 = vld [vmem:[#allocation6 + $0x40] sm:$0xff] }
  0x89   : > { %v370_v49 = vld [vmem:[#allocation6 + $0x58] sm:$0xff]  ;;  %v369_v50 = vld [vmem:[#allocation6 + $0x50] sm:$0xff]  ;;  %v372_v51 = vld [vmem:[#allocation6 + $0x68] sm:$0xff] }
  0x8a   : > { %v371_v52 = vld [vmem:[#allocation6 + $0x60] sm:$0xff]  ;;  %v374_v53 = vld [vmem:[#allocation6 + $0x78] sm:$0xff]  ;;  %v373_v54 = vld [vmem:[#allocation6 + $0x70] sm:$0xff] }
  0x8b   : > { %v408_v55 = vld [vmem:[#allocation7 + $0x8] sm:$0xff]  ;;  %v407_v56 = vld [vmem:[#allocation7] sm:$0xff]  ;;  %v410_v57 = vld [vmem:[#allocation7 + $0x18] sm:$0xff] }
  0x8c   : > { %297 = vrot.lane.b32.xlu1 %v272_v15, %s962_s28  ;;  %295 = vrot.lane.b32.xlu0 %v271_v16, %s962_s28  ;;  %v409_v58 = vld [vmem:[#allocation7 + $0x10] sm:$0xff]  ;;  %v412_v59 = vld [vmem:[#allocation7 + $0x28] sm:$0xff]  ;;  %v411_v60 = vld [vmem:[#allocation7 + $0x20] sm:$0xff] }
  0x8d   : > { %v414_v61 = vld [vmem:[#allocation7 + $0x38] sm:$0xff]  ;;  %v413_v62 = vld [vmem:[#allocation7 + $0x30] sm:$0xff]  ;;  %v416_v63 = vld [vmem:[#allocation7 + $0x48] sm:$0xff] }
  0x8e   : > { %v415_v0 = vld [vmem:[#allocation7 + $0x40] sm:$0xff]  ;;  %v418_v1 = vld [vmem:[#allocation7 + $0x58] sm:$0xff]  ;;  %v417_v2 = vld [vmem:[#allocation7 + $0x50] sm:$0xff] }
  0x8f   : > { %v420_v5 = vld [vmem:[#allocation7 + $0x68] sm:$0xff]  ;;  %v419_v6 = vld [vmem:[#allocation7 + $0x60] sm:$0xff]  ;;  %v422_v9 = vld [vmem:[#allocation7 + $0x78] sm:$0xff] }
  0x90   : > { %301 = vrot.lane.b32.xlu1 %v274_v17, %s962_s28  ;;  %299 = vrot.lane.b32.xlu0 %v273_v18, %s962_s28  ;;  %v421_v10 = vld [vmem:[#allocation7 + $0x70] sm:$0xff]  ;;  %v456_v13 = vld [vmem:[#allocation8 + $0x8] sm:$0xff]  ;;  %v455_v14 = vld [vmem:[#allocation8] sm:$0xff] }
  0x91   : > { %v458_v17 = vld [vmem:[#allocation8 + $0x18] sm:$0xff]  ;;  %v457_v18 = vld [vmem:[#allocation8 + $0x10] sm:$0xff] }
  0x94   : > { %305 = vrot.lane.b32.xlu1 %v276_v19, %s962_s28  ;;  %303 = vrot.lane.b32.xlu0 %v275_v20, %s962_s28 }
  0x98   : > { %309 = vrot.lane.b32.xlu1 %v278_v21, %s962_s28  ;;  %307 = vrot.lane.b32.xlu0 %v277_v22, %s962_s28  ;;  %v460_v21 = vld [vmem:[#allocation8 + $0x28] sm:$0xff]  ;;  %v459_v22 = vld [vmem:[#allocation8 + $0x20] sm:$0xff] }
  0x9c   : > { %329 = vrot.lane.b32.xlu1 %v312_v23, %s963_s6  ;;  %327 = vrot.lane.b32.xlu0 %v311_v24, %s963_s6 }
  0xa0   : > { %333 = vrot.lane.b32.xlu1 %v314_v25, %s963_s6  ;;  %331 = vrot.lane.b32.xlu0 %v313_v26, %s963_s6  ;;  %v462_v25 = vld [vmem:[#allocation8 + $0x38] sm:$0xff]  ;;  %v461_v26 = vld [vmem:[#allocation8 + $0x30] sm:$0xff] }
  0xa4   : > { %337 = vrot.lane.b32.xlu1 %v316_v27, %s963_s6  ;;  %335 = vrot.lane.b32.xlu0 %v315_v28, %s963_s6 }
  0xa8   : > { %341 = vrot.lane.b32.xlu1 %v318_v29, %s963_s6  ;;  %339 = vrot.lane.b32.xlu0 %v317_v30, %s963_s6  ;;  %v464_v29 = vld [vmem:[#allocation8 + $0x48] sm:$0xff]  ;;  %v463_v30 = vld [vmem:[#allocation8 + $0x40] sm:$0xff] }
  0xac   : > { %345 = vrot.lane.b32.xlu1 %v320_v31, %s963_s6  ;;  %343 = vrot.lane.b32.xlu0 %v319_v32, %s963_s6 }
  0xb0   : > { %349 = vrot.lane.b32.xlu1 %v322_v33, %s963_s6  ;;  %347 = vrot.lane.b32.xlu0 %v321_v34, %s963_s6  ;;  %v466_v33 = vld [vmem:[#allocation8 + $0x58] sm:$0xff]  ;;  %v465_v34 = vld [vmem:[#allocation8 + $0x50] sm:$0xff] }
  0xb4   : > { %353 = vrot.lane.b32.xlu1 %v324_v35, %s963_s6  ;;  %351 = vrot.lane.b32.xlu0 %v323_v36, %s963_s6 }
  0xb8   : > { %357 = vrot.lane.b32.xlu1 %v326_v37, %s963_s6  ;;  %355 = vrot.lane.b32.xlu0 %v325_v38, %s963_s6 }
  0xbc   : > { %377 = vrot.lane.b32.xlu1 %v360_v39, %s964_s25  ;;  %375 = vrot.lane.b32.xlu0 %v359_v40, %s964_s25  ;;  %v468_v39 = vld [vmem:[#allocation8 + $0x68] sm:$0xff]  ;;  %v467_v40 = vld [vmem:[#allocation8 + $0x60] sm:$0xff] }
  0xc0   : > { %381 = vrot.lane.b32.xlu1 %v362_v41, %s964_s25  ;;  %379 = vrot.lane.b32.xlu0 %v361_v42, %s964_s25 }
  0xc4   : > { %385 = vrot.lane.b32.xlu1 %v364_v43, %s964_s25  ;;  %383 = vrot.lane.b32.xlu0 %v363_v44, %s964_s25 }
  0xc8   : > { %389 = vrot.lane.b32.xlu1 %v366_v45, %s964_s25  ;;  %387 = vrot.lane.b32.xlu0 %v365_v46, %s964_s25  ;;  %v470_v45 = vld [vmem:[#allocation8 + $0x78] sm:$0xff]  ;;  %v469_v46 = vld [vmem:[#allocation8 + $0x70] sm:$0xff] }
  0xcc   : > { %393 = vrot.lane.b32.xlu1 %v368_v47, %s964_s25  ;;  %391 = vrot.lane.b32.xlu0 %v367_v48, %s964_s25 }
  0xd0   : > { %397 = vrot.lane.b32.xlu1 %v370_v49, %s964_s25  ;;  %395 = vrot.lane.b32.xlu0 %v369_v50, %s964_s25 }
  0xd4   : > { %401 = vrot.lane.b32.xlu1 %v372_v51, %s964_s25  ;;  %399 = vrot.lane.b32.xlu0 %v371_v52, %s964_s25 }
  0xd8   : > { %405 = vrot.lane.b32.xlu1 %v374_v53, %s964_s25  ;;  %403 = vrot.lane.b32.xlu0 %v373_v54, %s964_s25 }
  0xdc   : > { %425 = vrot.lane.b32.xlu1 %v408_v55, %s965_s4  ;;  %423 = vrot.lane.b32.xlu0 %v407_v56, %s965_s4 }
  0xe0   : > { %429 = vrot.lane.b32.xlu1 %v410_v57, %s965_s4  ;;  %427 = vrot.lane.b32.xlu0 %v409_v58, %s965_s4 }
  0xe4   : > { %433 = vrot.lane.b32.xlu1 %v412_v59, %s965_s4  ;;  %431 = vrot.lane.b32.xlu0 %v411_v60, %s965_s4 }
  0xe8   : > { %437 = vrot.lane.b32.xlu1 %v414_v61, %s965_s4  ;;  %435 = vrot.lane.b32.xlu0 %v413_v62, %s965_s4 }
  0xec   : > { %441 = vrot.lane.b32.xlu1 %v416_v63, %s965_s4  ;;  %439 = vrot.lane.b32.xlu0 %v415_v0, %s965_s4 }
  0xee   : > { %v284_v3 = vpop.permute.xlu1 %283  ;;  %v280_v4 = vpop.permute.xlu0 %279 }
  0xf0   : > { %445 = vrot.lane.b32.xlu1 %v418_v1, %s965_s4  ;;  %443 = vrot.lane.b32.xlu0 %v417_v2, %s965_s4 }
  0xf2   : > { %v286_v7 = vpop.permute.xlu1 %285  ;;  %v282_v8 = vpop.permute.xlu0 %281 }
  0xf4   : > { %449 = vrot.lane.b32.xlu1 %v420_v5, %s965_s4  ;;  %447 = vrot.lane.b32.xlu0 %v419_v6, %s965_s4 }
  0xf6   : > { %v290_v11 = vpop.permute.xlu1 %289  ;;  %v288_v12 = vpop.permute.xlu0 %287 }
  0xf8   : > { %453 = vrot.lane.b32.xlu1 %v422_v9, %s965_s4  ;;  %451 = vrot.lane.b32.xlu0 %v421_v10, %s965_s4 }
  0xfa   : > { %v294_v15 = vpop.permute.xlu1 %293  ;;  %v292_v16 = vpop.permute.xlu0 %291 }
  0xfc   : > { %473 = vrot.lane.b32.xlu1 %v456_v13, %s966_s5  ;;  %471 = vrot.lane.b32.xlu0 %v455_v14, %s966_s5 }
  0xfe   : > { %v298_v19 = vpop.permute.xlu1 %297  ;;  %v296_v20 = vpop.permute.xlu0 %295 }
 0x100   : > { %477 = vrot.lane.b32.xlu1 %v458_v17, %s966_s5  ;;  %475 = vrot.lane.b32.xlu0 %v457_v18, %s966_s5 }
 0x102   : > { %v302_v23 = vpop.permute.xlu1 %301  ;;  %v300_v24 = vpop.permute.xlu0 %299 }
 0x104   : > { %481 = vrot.lane.b32.xlu1 %v460_v21, %s966_s5  ;;  %479 = vrot.lane.b32.xlu0 %v459_v22, %s966_s5 }
 0x106   : > { %v306_v27 = vpop.permute.xlu1 %305  ;;  %v304_v28 = vpop.permute.xlu0 %303 }
 0x108   : > { %485 = vrot.lane.b32.xlu1 %v462_v25, %s966_s5  ;;  %483 = vrot.lane.b32.xlu0 %v461_v26, %s966_s5 }
 0x10a   : > { %v310_v31 = vpop.permute.xlu1 %309  ;;  %v308_v32 = vpop.permute.xlu0 %307 }
 0x10c   : > { %489 = vrot.lane.b32.xlu1 %v464_v29, %s966_s5  ;;  %487 = vrot.lane.b32.xlu0 %v463_v30, %s966_s5 }
 0x10e   : > { %v330_v35 = vpop.permute.xlu1 %329  ;;  %v328_v36 = vpop.permute.xlu0 %327 }
 0x10f   : > { %v1140_v37 = vmul.f32 %v330_v35, %v282_v8  ;;  %v1142_v38 = vmul.f32 %v328_v36, %v280_v4 }
 0x110   : > { %493 = vrot.lane.b32.xlu1 %v466_v33, %s966_s5  ;;  %491 = vrot.lane.b32.xlu0 %v465_v34, %s966_s5 }
 0x112   : > { %v334_v41 = vpop.permute.xlu1 %333  ;;  %v332_v42 = vpop.permute.xlu0 %331 }
 0x113   : > { %v1146_v43 = vmul.f32 %v334_v41, %v286_v7  ;;  %v1148_v44 = vmul.f32 %v332_v42, %v284_v3  ;;  %v231_v41 = vld [vmem:[#allocation2] sm:$0xff] }
 0x114   : > { %497 = vrot.lane.b32.xlu1 %v468_v39, %s966_s5  ;;  %495 = vrot.lane.b32.xlu0 %v467_v40, %s966_s5  ;;  %v232_v39 = vld [vmem:[#allocation2 + $0x8] sm:$0xff]  ;;  %v247_v42 = vld [vmem:[#allocation3] sm:$0xff] }
 0x115   : > { %v248_v40 = vld [vmem:[#allocation3 + $0x8] sm:$0xff] }
 0x116   : > { %v338_v47 = vpop.permute.xlu1 %337  ;;  %v336_v48 = vpop.permute.xlu0 %335 }
 0x117   : > { %v1152_v49 = vmul.f32 %v338_v47, %v290_v11  ;;  %v1154_v50 = vmul.f32 %v336_v48, %v288_v12  ;;  %v504_v48 = vmul.f32 %v248_v40, %v232_v39 }
 0x118   : > { %501 = vrot.lane.b32.xlu1 %v470_v45, %s966_s5  ;;  %499 = vrot.lane.b32.xlu0 %v469_v46, %s966_s5  ;;  %v234_v45 = vld [vmem:[#allocation2 + $0x18] sm:$0xff] }
 0x11a   : > { %v342_v51 = vpop.permute.xlu1 %341  ;;  %v340_v52 = vpop.permute.xlu0 %339 }
 0x11b   : > { %v1158_v53 = vmul.f32 %v342_v51, %v294_v15  ;;  %v1160_v54 = vmul.f32 %v340_v52, %v292_v16  ;;  %v503_v51 = vmul.f32 %v247_v42, %v231_v41  ;;  %v250_v52 = vld [vmem:[#allocation3 + $0x18] sm:$0xff] }
 0x11e   : > { %v346_v55 = vpop.permute.xlu1 %345  ;;  %v344_v56 = vpop.permute.xlu0 %343 }
 0x11f   : > { %v1162_v57 = vmul.f32 %v346_v55, %v298_v19  ;;  %v1164_v58 = vmul.f32 %v344_v56, %v296_v20  ;;  %v233_v55 = vld [vmem:[#allocation2 + $0x10] sm:$0xff] }
 0x120   : > { %v249_v56 = vld [vmem:[#allocation3 + $0x10] sm:$0xff] }
 0x122   : > { %v350_v59 = vpop.permute.xlu1 %349  ;;  %v348_v60 = vpop.permute.xlu0 %347 }
 0x123   : > { %v1166_v61 = vmul.f32 %v350_v59, %v302_v23  ;;  %v1168_v62 = vmul.f32 %v348_v60, %v300_v24 }
 0x126   : > { %v354_v63 = vpop.permute.xlu1 %353  ;;  %v352_v0 = vpop.permute.xlu0 %351 }
 0x127   : > { %v1170_v1 = vmul.f32 %v354_v63, %v306_v27  ;;  %v1172_v2 = vmul.f32 %v352_v0, %v304_v28  ;;  %v506_v63 = vmul.f32 %v250_v52, %v234_v45  ;;  %v505_v0 = vmul.f32 %v249_v56, %v233_v55 }
 0x129   : > { %1307 = vst [vmem:[#allocation24_spill] sm:$0xff] %v1170_v1  ;;  %1308 = vst [vmem:[#allocation25_spill] sm:$0xff] %v1172_v2  ;;  %v251_v2 = vld [vmem:[#allocation3 + $0x20] sm:$0xff] }
 0x12a   : > { %v358_v3 = vpop.permute.xlu1 %357  ;;  %v356_v4 = vpop.permute.xlu0 %355 }
 0x12b   : > { %v1174_v5 = vmul.f32 %v358_v3, %v310_v31  ;;  %v1176_v6 = vmul.f32 %v356_v4, %v308_v32  ;;  %v236_v3 = vld [vmem:[#allocation2 + $0x28] sm:$0xff] }
 0x12d   : > { %1309 = vst [vmem:[#allocation26_spill] sm:$0xff] %v1174_v5  ;;  %1310 = vst [vmem:[#allocation27_spill] sm:$0xff] %v1176_v6  ;;  %v536_v5 = vmul.f32 %v1140_v37, %v504_v48  ;;  %v537_v37 = vmul.f32 %v1148_v44, %v505_v0  ;;  %v254_v48 = vld [vmem:[#allocation3 + $0x38] sm:$0xff] }
 0x12e   : > { %v378_v7 = vpop.permute.xlu1 %377  ;;  %v376_v8 = vpop.permute.xlu0 %375 }
 0x132   : > { %v382_v9 = vpop.permute.xlu1 %381  ;;  %v380_v10 = vpop.permute.xlu0 %379 }
 0x136   : > { %v1178_v11 = vpop.permute.xlu1 %385  ;;  %v1180_v12 = vpop.permute.xlu0 %383 }
 0x13a   : > { %v1182_v13 = vpop.permute.xlu1 %389  ;;  %v1184_v14 = vpop.permute.xlu0 %387 }
 0x13e   : > { %v1186_v15 = vpop.permute.xlu1 %393  ;;  %v1188_v16 = vpop.permute.xlu0 %391 }
 0x142   : > { %v1190_v17 = vpop.permute.xlu1 %397  ;;  %v1192_v18 = vpop.permute.xlu0 %395 }
 0x146   : > { %v1194_v19 = vpop.permute.xlu1 %401  ;;  %v1196_v20 = vpop.permute.xlu0 %399 }
 0x14a   : > { %v1198_v21 = vpop.permute.xlu1 %405  ;;  %v1200_v22 = vpop.permute.xlu0 %403 }
 0x14b   : > { %1311 = vst [vmem:[#allocation28_spill] sm:$0xff] %v1198_v21  ;;  %1312 = vst [vmem:[#allocation29_spill] sm:$0xff] %v1200_v22  ;;  %v535_v22 = vmul.f32 %v1142_v38, %v503_v51  ;;  %v252_v21 = vld [vmem:[#allocation3 + $0x28] sm:$0xff]  ;;  %v237_v38 = vld [vmem:[#allocation2 + $0x30] sm:$0xff] }
 0x14c   : > { %v253_v51 = vld [vmem:[#allocation3 + $0x30] sm:$0xff] }
 0x14e   : > { %v426_v23 = vpop.permute.xlu1 %425  ;;  %v424_v24 = vpop.permute.xlu0 %423 }
 0x14f   : > { %v552_v59 = vmul.f32 %v426_v23, %v378_v7  ;;  %v551_v60 = vmul.f32 %v424_v24, %v376_v8  ;;  %v538_v7 = vmul.f32 %v1146_v43, %v506_v63  ;;  %v508_v8 = vmul.f32 %v252_v21, %v236_v3  ;;  %v238_v24 = vld [vmem:[#allocation2 + $0x38] sm:$0xff]  ;;  %v240_v21 = vld [vmem:[#allocation2 + $0x48] sm:$0xff] }
 0x150   : > { %v242_v3 = vld [vmem:[#allocation2 + $0x58] sm:$0xff] }
 0x151   : > { %v540_v44 = vmul.f32 %v1152_v49, %v508_v8 }
 0x152   : > { %v430_v25 = vpop.permute.xlu1 %429  ;;  %v428_v26 = vpop.permute.xlu0 %427 }
 0x153   : > { %v554_v40 = vmul.f32 %v430_v25, %v382_v9  ;;  %v553_v41 = vmul.f32 %v428_v26, %v380_v10  ;;  %v510_v10 = vmul.f32 %v254_v48, %v238_v24  ;;  %v260_v48 = vld [vmem:[#allocation3 + $0x68] sm:$0xff] }
 0x155   : > { %v542_v63 = vmul.f32 %v1158_v53, %v510_v10 }
 0x156   : > { %v434_v27 = vpop.permute.xlu1 %433  ;;  %v432_v28 = vpop.permute.xlu0 %431 }
 0x15a   : > { %v1202_v29 = vpop.permute.xlu1 %437  ;;  %v1204_v30 = vpop.permute.xlu0 %435 }
 0x15e   : > { %v1206_v31 = vpop.permute.xlu1 %441  ;;  %v1208_v32 = vpop.permute.xlu0 %439 }
 0x15f   : > { %v559_v53 = vmul.f32 %v1208_v32, %v1188_v16 }
 0x162   : > { %v1210_v33 = vpop.permute.xlu1 %445  ;;  %v1212_v34 = vpop.permute.xlu0 %443 }
 0x166   : > { %v1214_v35 = vpop.permute.xlu1 %449  ;;  %v1216_v36 = vpop.permute.xlu0 %447 }
 0x16a   : > { %v1218_v46 = vpop.permute.xlu1 %453  ;;  %v1220_v47 = vpop.permute.xlu0 %451 }
 0x16b   : > { %1313 = vst [vmem:[#allocation30_spill] sm:$0xff] %v1218_v46  ;;  %1314 = vst [vmem:[#allocation31_spill] sm:$0xff] %v1220_v47  ;;  %v235_v46 = vld [vmem:[#allocation2 + $0x20] sm:$0xff] }
 0x16c   : > { %v507_v23 = vmul.f32 %v251_v2, %v235_v46  ;;  %v509_v2 = vmul.f32 %v253_v51, %v237_v38  ;;  %v256_v46 = vld [vmem:[#allocation3 + $0x48] sm:$0xff]  ;;  %v243_v38 = vld [vmem:[#allocation2 + $0x60] sm:$0xff] }
 0x16d   : > { %v512_v0 = vmul.f32 %v256_v46, %v240_v21  ;;  %v259_v51 = vld [vmem:[#allocation3 + $0x60] sm:$0xff]  ;;  %v245_v21 = vld [vmem:[#allocation2 + $0x70] sm:$0xff] }
 0x16e   : > { %v474_v4 = vpop.permute.xlu1 %473  ;;  %v472_v6 = vpop.permute.xlu0 %471  ;;  %v539_v26 = vmul.f32 %v1154_v50, %v507_v23 }
 0x16f   : > { %v568_v47 = vmul.f32 %v552_v59, %v474_v4  ;;  %v567_v39 = vmul.f32 %v551_v60, %v472_v6  ;;  %v556_v6 = vmul.f32 %v434_v27, %v1178_v11  ;;  %v255_v59 = vld [vmem:[#allocation3 + $0x40] sm:$0xff]  ;;  %v558_v11 = vmul.f32 %v1202_v29, %v1182_v13 }
 0x170   : > { %v560_v13 = vmul.f32 %v1206_v31, %v1186_v15  ;;  %v562_v15 = vmul.f32 %v1210_v33, %v1190_v17  ;;  %v564_v17 = vmul.f32 %v1214_v35, %v1194_v19  ;;  %v1319_v35 = vld [vmem:[#allocation29_spill] sm:$0xff] }
 0x171   : > { %v584_v42 = vmul.f32 %v568_v47, %v536_v5  ;;  %v583_v1 = vmul.f32 %v567_v39, %v535_v22  ;;  %v555_v5 = vmul.f32 %v432_v28, %v1180_v12  ;;  %v239_v47 = vld [vmem:[#allocation2 + $0x40] sm:$0xff]  ;;  %v557_v12 = vmul.f32 %v1204_v30, %v1184_v14 }
 0x172   : > { %v478_v45 = vpop.permute.xlu1 %477  ;;  %v476_v52 = vpop.permute.xlu0 %475  ;;  %v511_v49 = vmul.f32 %v255_v59, %v239_v47  ;;  %v541_v39 = vmul.f32 %v1160_v54, %v509_v2  ;;  %v544_v30 = vmul.f32 %v1162_v57, %v512_v0  ;;  %v244_v54 = vld [vmem:[#allocation2 + $0x68] sm:$0xff]  ;;  %v561_v57 = vmul.f32 %v1212_v34, %v1192_v18  ;;  %v262_v2 = vld [vmem:[#allocation3 + $0x78] sm:$0xff] }
 0x173   : > { %v570_v55 = vmul.f32 %v554_v40, %v478_v45  ;;  %v569_v56 = vmul.f32 %v553_v41, %v476_v52  ;;  %601 = vadd.xlane.f32.xlu1 %v584_v42  ;;  %599 = vadd.xlane.f32.xlu0 %v583_v1  ;;  %v258_v40 = vld [vmem:[#allocation3 + $0x58] sm:$0xff]  ;;  %v241_v41 = vld [vmem:[#allocation2 + $0x50] sm:$0xff] }
 0x174   : > { %v257_v42 = vld [vmem:[#allocation3 + $0x50] sm:$0xff]  ;;  %v514_v23 = vmul.f32 %v258_v40, %v242_v3  ;;  %v1315_v34 = vld [vmem:[#allocation24_spill] sm:$0xff] }
 0x175   : > { %v585_v9 = vmul.f32 %v569_v56, %v537_v37  ;;  %v586_v43 = vmul.f32 %v570_v55, %v538_v7  ;;  %v513_v24 = vmul.f32 %v257_v42, %v241_v41  ;;  %v543_v37 = vmul.f32 %v1164_v58, %v511_v49  ;;  %v246_v58 = vld [vmem:[#allocation2 + $0x78] sm:$0xff]  ;;  %v1321_v49 = vld [vmem:[#allocation26_spill] sm:$0xff] }
 0x176   : > { %v482_v22 = vpop.permute.xlu1 %481  ;;  %v480_v25 = vpop.permute.xlu0 %479  ;;  %v546_v32 = vmul.f32 %v1166_v61, %v514_v23  ;;  %v563_v61 = vmul.f32 %v1216_v36, %v1196_v20  ;;  %v518_v46 = vmul.f32 %v262_v2, %v246_v58 }
 0x177   : > { %v572_v60 = vmul.f32 %v556_v6, %v482_v22  ;;  %v571_v1 = vmul.f32 %v555_v5, %v480_v25  ;;  %603 = vadd.xlane.f32.xlu0 %v585_v9  ;;  %v516_v6 = vmul.f32 %v260_v48, %v244_v54  ;;  %v515_v5 = vmul.f32 %v259_v51, %v243_v38  ;;  %v261_v22 = vld [vmem:[#allocation3 + $0x70] sm:$0xff] }
 0x178   : > { %v545_v10 = vmul.f32 %v1168_v62, %v513_v24  ;;  %v517_v47 = vmul.f32 %v261_v22, %v245_v21  ;;  %v550_v3 = vmul.f32 %v1321_v49, %v518_v46 }
 0x179   : > { %v587_v27 = vmul.f32 %v571_v1, %v539_v26  ;;  %v588_v28 = vmul.f32 %v572_v60, %v540_v44  ;;  %v548_v26 = vmul.f32 %v1315_v34, %v516_v6  ;;  %v1316_v60 = vld [vmem:[#allocation25_spill] sm:$0xff] }
 0x17a   : > { %v486_v50 = vpop.permute.xlu1 %485  ;;  %v484_v4 = vpop.permute.xlu0 %483  ;;  %v547_v1 = vmul.f32 %v1316_v60, %v515_v5 }
 0x17b   : > { %v574_v7 = vmul.f32 %v558_v11, %v486_v50  ;;  %v573_v8 = vmul.f32 %v557_v12, %v484_v4  ;;  %607 = vadd.xlane.f32.xlu1 %v587_v27  ;;  %605 = vadd.xlane.f32.xlu0 %v586_v43  ;;  %v1317_v27 = vld [vmem:[#allocation28_spill] sm:$0xff] }
 0x17d   : > { %v589_v14 = vmul.f32 %v573_v8, %v541_v39  ;;  %v590_v29 = vmul.f32 %v574_v7, %v542_v63  ;;  %v1320_v63 = vld [vmem:[#allocation31_spill] sm:$0xff] }
 0x17e   : > { %v490_v45 = vpop.permute.xlu1 %489  ;;  %v488_v52 = vpop.permute.xlu0 %487  ;;  %v565_v20 = vmul.f32 %v1320_v63, %v1319_v35  ;;  %v1322_v39 = vld [vmem:[#allocation27_spill] sm:$0xff] }
 0x17f   : > { %v576_v55 = vmul.f32 %v560_v13, %v490_v45  ;;  %v575_v56 = vmul.f32 %v559_v53, %v488_v52  ;;  %611 = vadd.xlane.f32.xlu1 %v589_v14  ;;  %609 = vadd.xlane.f32.xlu0 %v588_v28  ;;  %v1318_v28 = vld [vmem:[#allocation30_spill] sm:$0xff]  ;;  %v549_v40 = vmul.f32 %v1322_v39, %v517_v47 }
 0x180   : > { %v566_v19 = vmul.f32 %v1318_v28, %v1317_v27 }
 0x181   : > { %v591_v16 = vmul.f32 %v575_v56, %v543_v37  ;;  %v592_v31 = vmul.f32 %v576_v55, %v544_v30 }
 0x182   : > { %v494_v9 = vpop.permute.xlu1 %493  ;;  %v492_v43 = vpop.permute.xlu0 %491 }
 0x183   : > { %v578_v25 = vmul.f32 %v562_v15, %v494_v9  ;;  %v577_v44 = vmul.f32 %v561_v57, %v492_v43  ;;  %615 = vadd.xlane.f32.xlu1 %v591_v16  ;;  %613 = vadd.xlane.f32.xlu0 %v590_v29 }
 0x185   : > { %v593_v18 = vmul.f32 %v577_v44, %v545_v10  ;;  %v594_v33 = vmul.f32 %v578_v25, %v546_v32 }
 0x186   : > { %v498_v62 = vpop.permute.xlu1 %497  ;;  %v496_v59 = vpop.permute.xlu0 %495 }
 0x187   : > { %v580_v11 = vmul.f32 %v564_v17, %v498_v62  ;;  %v579_v12 = vmul.f32 %v563_v61, %v496_v59  ;;  %619 = vadd.xlane.f32.xlu1 %v593_v18  ;;  %617 = vadd.xlane.f32.xlu0 %v592_v31 }
 0x189   : > { %v595_v36 = vmul.f32 %v579_v12, %v547_v1  ;;  %v596_v0 = vmul.f32 %v580_v11, %v548_v26 }
 0x18a   : > { %v502_v50 = vpop.permute.xlu1 %501  ;;  %v500_v4 = vpop.permute.xlu0 %499 }
 0x18b   : > { %v582_v41 = vmul.f32 %v566_v19, %v502_v50  ;;  %v581_v42 = vmul.f32 %v565_v20, %v500_v4  ;;  %623 = vadd.xlane.f32.xlu1 %v595_v36  ;;  %621 = vadd.xlane.f32.xlu0 %v594_v33 }
 0x18d   : > { %v597_v7 = vmul.f32 %v581_v42, %v549_v40  ;;  %v598_v8 = vmul.f32 %v582_v41, %v550_v3 }
 0x18f   : > { %627 = vadd.xlane.f32.xlu1 %v597_v7  ;;  %625 = vadd.xlane.f32.xlu0 %v596_v0 }
 0x193   : > { %629 = vadd.xlane.f32.xlu0 %v598_v8 }
 0x1fc   : > { %v602_v13 = vpop.xlane.xlu1 %601  ;;  %v600_v53 = vpop.xlane.xlu0 %599 }
 0x1fd   : > { %633 = vst.msk [vmem:[%s1094_s29 + $0x8] sm:$0xff] %vm631_vm0, %v602_v13  ;;  %632 = vst.msk [vmem:[%s1094_s29] sm:$0xff] %vm631_vm0, %v600_v53 }
 0x200   : > { %v604_v14 = vpop.xlane.xlu0 %603 }
 0x201   : > { %634 = vst.msk [vmem:[%s1094_s29 + $0x10] sm:$0xff] %vm631_vm0, %v604_v14 }
 0x204   : > { %v608_v29 = vpop.xlane.xlu1 %607  ;;  %v606_v30 = vpop.xlane.xlu0 %605 }
 0x205   : > { %636 = vst.msk [vmem:[%s1094_s29 + $0x20] sm:$0xff] %vm631_vm0, %v608_v29  ;;  %635 = vst.msk [vmem:[%s1094_s29 + $0x18] sm:$0xff] %vm631_vm0, %v606_v30 }
 0x208   : > { %v612_v23 = vpop.xlane.xlu1 %611  ;;  %v610_v24 = vpop.xlane.xlu0 %609 }
 0x209   : > { %638 = vst.msk [vmem:[%s1094_s29 + $0x30] sm:$0xff] %vm631_vm0, %v612_v23  ;;  %637 = vst.msk [vmem:[%s1094_s29 + $0x28] sm:$0xff] %vm631_vm0, %v610_v24 }
 0x20c   : > { %v616_v54 = vpop.xlane.xlu1 %615  ;;  %v614_v45 = vpop.xlane.xlu0 %613 }
 0x20d   : > { %640 = vst.msk [vmem:[%s1094_s29 + $0x40] sm:$0xff] %vm631_vm0, %v616_v54  ;;  %639 = vst.msk [vmem:[%s1094_s29 + $0x38] sm:$0xff] %vm631_vm0, %v614_v45 }
 0x210   : > { %v620_v52 = vpop.xlane.xlu1 %619  ;;  %v618_v37 = vpop.xlane.xlu0 %617 }
 0x211   : > { %642 = vst.msk [vmem:[%s1094_s29 + $0x50] sm:$0xff] %vm631_vm0, %v620_v52  ;;  %641 = vst.msk [vmem:[%s1094_s29 + $0x48] sm:$0xff] %vm631_vm0, %v618_v37 }
 0x214   : > { %v624_v48 = vpop.xlane.xlu1 %623  ;;  %v622_v38 = vpop.xlane.xlu0 %621 }
 0x215   : > { %644 = vst.msk [vmem:[%s1094_s29 + $0x60] sm:$0xff] %vm631_vm0, %v624_v48  ;;  %643 = vst.msk [vmem:[%s1094_s29 + $0x58] sm:$0xff] %vm631_vm0, %v622_v38 }
 0x218   : > { %v628_v51 = vpop.xlane.xlu1 %627  ;;  %v626_v55 = vpop.xlane.xlu0 %625 }
 0x219   : > { %646 = vst.msk [vmem:[%s1094_s29 + $0x70] sm:$0xff] %vm631_vm0, %v628_v51  ;;  %645 = vst.msk [vmem:[%s1094_s29 + $0x68] sm:$0xff] %vm631_vm0, %v626_v55 }
 0x21c   : > { %v630_v56 = vpop.xlane.xlu0 %629 }
 0x21d   : > { %647 = vst.msk [vmem:[%s1094_s29 + $0x78] sm:$0xff] %vm631_vm0, %v630_v56 }
 0x21e PF: > { %s47_s13 = sadd.s32 1, %s945_s13  }
 0x21f   : > { %p44_p0 = scmp.ge.s32.totalorder %s47_s13, 4  }
 0x221   :  { %46 = sbr.rel (!%p44_p0) target bundleno = 60 (0x3c), region = 96 }
 0x226   :  { %670 = vsyncpa [#allocation18], 1 }
 0x227   :  { %672 = vsyncpa [#allocation18 + $0x1], 1 }
 0x228   :  { %673 = vsyncpa [#allocation20], 1 }

</bundles_post_ra>
